<compile_context>
chip_gen: v7x
topology: tpu7x:2x2x1
jax: 0.10.0
libtpu: 0.0.40
codegen_flags: <defaults>
</compile_context>

<pallas_src>
import functools

import jax
import jax.numpy as jnp
import numpy as np
from jax import lax
from jax.experimental import pallas as pl
from jax.experimental.pallas import tpu as pltpu


# ----------------------------- Pallas kernel --------------------------------
def _yolo_loss_kernel(fused_ref, out_ref, *, grid_num, img_size,
                      lambda_coord, lambda_noobj, sub_tiles, unroll):
    """Accumulate per-(sublane, lane) partial loss for one input block.

    fused_ref : (15, block_rows, 128) VMEM block, channel-major:
                rows 0..9  = prediction (cx, cy, w, h, conf) x 2 boxes
                rows 10..14 = truth      (cx, cy, w, h, has_obj)
    out_ref   : (8, 128) resident accumulator (same block every grid step).

    Correctness guards (do NOT "fix"):
      * The (+gi*gs, +gj*gs) grid translation of the reference cancels in
        every IoU corner difference, so it is dropped.  This relies on no
        absolute-coordinate clamping ever being added.
      * ymax_true intentionally uses the *width* half-extent, reproducing the
        reference implementation's bug.
      * Padded cells are exactly zero -> has_obj == 0 and conf == 0, so they
        fall into the no-object branch and contribute exactly 0.
    """
    eps = 1e-12
    gs = float(img_size) / float(grid_num)
    half_img = 0.5 * float(img_size)

    @pl.when(pl.program_id(0) == 0)
    def _init():
        out_ref[...] = jnp.zeros_like(out_ref)

    def sub_tile(g, acc):
        start = pl.multiple_of(g * 8, 8)
        tile = fused_ref[:, pl.ds(start, 8), :]          # (15, 8, 128)
        p = [tile[c] for c in range(10)]                 # each (8, 128)
        t = [tile[10 + c] for c in range(5)]

        # Ground-truth corners (translation dropped; width bug kept).
        cx_t = t[0] * gs
        cy_t = t[1] * gs
        wh_t = t[2] * half_img
        hh_t = t[3] * half_img
        xmin_t = cx_t - wh_t
        xmax_t = cx_t + wh_t
        ymin_t = cy_t - hh_t
        ymax_t = cy_t + wh_t                 # (sic) reference uses w_true here
        area_t = (xmax_t - xmin_t) * (ymax_t - ymin_t)

        def box_terms(off):
            cx_p = p[off + 0] * gs
            cy_p = p[off + 1] * gs
            wh_p = p[off + 2] * half_img
            hh_p = p[off + 3] * half_img
            xmin_p = cx_p - wh_p
            xmax_p = cx_p + wh_p
            ymin_p = cy_p - hh_p
            ymax_p = cy_p + hh_p
            # Clamped intersection == reference's "no overlap -> iou 0".
            iw = jnp.maximum(jnp.minimum(xmax_p, xmax_t)
                             - jnp.maximum(xmin_p, xmin_t), 0.0)
            ih = jnp.maximum(jnp.minimum(ymax_p, ymax_t)
                             - jnp.maximum(ymin_p, ymin_t), 0.0)
            area_u = iw * ih
            area_p = (xmax_p - xmin_p) * (ymax_p - ymin_p)
            denom = area_p + area_t - area_u + eps       # always > 0
            iou = area_u * pl.reciprocal(denom, approx=True)   # EUP slot
            return iou, area_u, denom

        iou0, au0, d0 = box_terms(0)
        iou1, au1, d1 = box_terms(5)
        # Exact cross-multiplied tie-break (denominators positive), so the
        # approximate reciprocal cannot flip the chosen box for near-ties.
        # torch picks box 0 only if iou0 > iou1; ties pick box 1.
        choose1 = jnp.logical_not(au0 * d1 > au1 * d0)

        # ---- object cells ----
        conf_p = jnp.where(choose1, p[9], p[4])
        iou_ch = jnp.where(choose1, iou1, iou0)
        loss_conf_obj = (conf_p - iou_ch) ** 2

        px = jnp.where(choose1, p[5], p[0])
        py = jnp.where(choose1, p[6], p[1])
        loss_coord = lambda_coord * ((px - t[0]) ** 2 + (py - t[1]) ** 2)

        pw = jnp.maximum(jnp.where(choose1, p[7], p[2]), eps)
        ph = jnp.maximum(jnp.where(choose1, p[8], p[3]), eps)
        tw = jnp.maximum(t[2], eps)
        th = jnp.maximum(t[3], eps)
        loss_scale = lambda_coord * ((jnp.sqrt(pw) - jnp.sqrt(tw)) ** 2 +
                                     (jnp.sqrt(ph) - jnp.sqrt(th)) ** 2)

        # ---- no-object cells (zero-padded cells land here, contribute 0) ----
        loss_noobj = lambda_noobj * (p[4] * p[4] + p[9] * p[9])

        contrib = jnp.where(t[4] == 1.0,
                            loss_conf_obj + loss_coord + loss_scale,
                            loss_noobj)
        return acc + contrib

    block_sum = lax.fori_loop(0, sub_tiles, sub_tile,
                              jnp.zeros((8, 128), jnp.float32),
                              unroll=unroll)
    out_ref[...] += block_sum


# ------------------------------ wrapper --------------------------------------
def yolov1_loss_pallas(y_pre, y_true, *, grid_num=7, img_size=448,
                       lambda_coord=2.0, lambda_noobj=0.1, block_rows=512):
    """y_pre: [B, S, S, 10], y_true: [B, S, S, 5] -> loss of shape (1,)."""
    B, S1, S2, C = y_pre.shape
    assert S1 == grid_num and S2 == grid_num and C == 10
    assert y_true.shape == (B, grid_num, grid_num, 5)

    N = B * grid_num * grid_num
    rows = int(pl.cdiv(N, 128))               # 128-cell lane rows
    rows8 = int(pl.cdiv(rows, 8)) * 8         # round up to sublane multiple
    block_rows = max(8, (int(block_rows) // 8) * 8)
    br = min(block_rows, rows8)               # single block when it all fits
    rows_pad = int(pl.cdiv(rows8, br)) * br
    num_blocks = rows_pad // br
    n_pad_total = rows_pad * 128

    sub_tiles = br // 8
    unroll = sub_tiles <= 8                   # unroll only short inner loops

    # Fused channel-major slab.  Pad along N BEFORE the transpose so the pad is
    # a contiguous tail write and the transpose is a clean (Np,15)->(15,Np).
    fused = jnp.concatenate(
        [y_pre.reshape(N, 10).astype(jnp.float32),
         y_true.reshape(N, 5).astype(jnp.float32)], axis=-1)        # (N, 15)
    fused = jnp.pad(fused, ((0, n_pad_total - N), (0, 0)))          # (Np, 15)
    fused = fused.T.reshape(15, rows_pad, 128)

    kernel = functools.partial(
        _yolo_loss_kernel,
        grid_num=grid_num, img_size=img_size,
        lambda_coord=float(lambda_coord), lambda_noobj=float(lambda_noobj),
        sub_tiles=sub_tiles, unroll=unroll)

    partial_sum = pl.pallas_call(
        kernel,
        grid=(num_blocks,),
        in_specs=[pl.BlockSpec((15, br, 128), lambda i: (0, i, 0))],
        # Resident (8,128) accumulator: constant output block index, so Pallas
        # keeps it in VMEM across grid steps and writes back once at the end.
        out_specs=pl.BlockSpec((8, 128), lambda i: (0, 0)),
        out_shape=jax.ShapeDtypeStruct((8, 128), jnp.float32),
        compiler_params=pltpu.CompilerParams(
            dimension_semantics=("arbitrary",)),
    )(fused)

    # Tiny final (8,128) reduction + /batch_size in plain XLA.
    # PyTorch module returns a shape-(1,) tensor; keep that convention.
    return (jnp.sum(partial_sum) / jnp.float32(B)).reshape(1)


# ----------------------- pure-numpy reference (torch loops) ------------------
def _iou_ref(bp, bt, gi, gj, img_size=448, grid_num=7):
    gs = img_size / grid_num
    cxp = bp[0] * gs + gj * gs
    cyp = bp[1] * gs + gi * gs
    wp = bp[2] * img_size
    hp = bp[3] * img_size
    x0p, y0p, x1p, y1p = cxp - wp / 2, cyp - hp / 2, cxp + wp / 2, cyp + hp / 2
    cxt = bt[0] * gs + gj * gs
    cyt = bt[1] * gs + gi * gs
    wt = bt[2] * img_size
    ht = bt[3] * img_size
    x0t, y0t, x1t = cxt - wt / 2, cyt - ht / 2, cxt + wt / 2
    y1t = cyt + wt / 2  # reproduce width-for-height bug
    ux0, ux1 = max(x0p, x0t), min(x1p, x1t)
    uy0, uy1 = max(y0p, y0t), min(y1p, y1t)
    if ux0 >= ux1 or uy0 >= uy1:
        return 0.0
    au = (ux1 - ux0) * (uy1 - uy0)
    ap = (x1p - x0p) * (y1p - y0p)
    at = (x1t - x0t) * (y1t - y0t)
    return au / (ap + at - au + 1e-12)


def yolov1_loss_ref(y_pre, y_true, grid_num=7, img_size=448,
                    lambda_coord=2.0, lambda_noobj=0.1):
    y_pre = np.asarray(y_pre, np.float64)
    y_true = np.asarray(y_true, np.float64)
    eps = 1e-12
    lc = lcd = ls = 0.0
    B = y_pre.shape[0]
    for b in range(B):
        for i in range(grid_num):
            for j in range(grid_num):
                if y_true[b, i, j, 4] == 1.0:
                    c0 = _iou_ref(y_pre[b, i, j, 0:4], y_true[b, i, j, 0:4], i, j,
                                  img_size, grid_num)
                    c1 = _iou_ref(y_pre[b, i, j, 5:9], y_true[b, i, j, 0:4], i, j,
                                  img_size, grid_num)
                    cb = 0 if c0 > c1 else 1
                    cp = y_pre[b, i, j, 5 * cb + 4]
                    lc += (cp - (c0 if cb == 0 else c1)) ** 2
                    lcd += lambda_coord * np.sum(
                        (y_pre[b, i, j, 5 * cb:5 * cb + 2] - y_true[b, i, j, 0:2]) ** 2)
                    pwh = np.clip(y_pre[b, i, j, 5 * cb + 2:5 * cb + 4], eps, None)
                    twh = np.clip(y_true[b, i, j, 2:4], eps, None)
                    ls += lambda_coord * np.sum((np.sqrt(pwh) - np.sqrt(twh)) ** 2)
                else:
                    lc += lambda_noobj * y_pre[b, i, j, 4] ** 2
                    lc += lambda_noobj * y_pre[b, i, j, 9] ** 2
    return (lc + lcd + ls) / B


# --------------------------------- main ---------------------------------------
if __name__ == "__main__":
    B, S = 2, 7
    key = jax.random.PRNGKey(0)
    k1, k2, k3 = jax.random.split(key, 3)

    # predictions: 2 boxes per cell, values in [0, 1]
    y_pre = jax.random.uniform(k1, (B, S, S, 10), dtype=jnp.float32)
    # ground truth: (cx, cy, w, h) in [0, 1], has_obj in {0.0, 1.0}
    box_true = jax.random.uniform(k2, (B, S, S, 4), dtype=jnp.float32)
    has_obj = jax.random.bernoulli(k3, 0.3, (B, S, S, 1)).astype(jnp.float32)
    y_true = jnp.concatenate([box_true, has_obj], axis=-1)

    loss = yolov1_loss_pallas(y_pre, y_true)
    loss = jax.block_until_ready(loss)

    ref = yolov1_loss_ref(np.asarray(y_pre), np.asarray(y_true))
    # Tolerance accounts for the EUP approximate reciprocal vs the f64 loop ref.
    np.testing.assert_allclose(np.asarray(loss)[0], ref, rtol=2e-3, atol=2e-3)

    print("KERNEL_OK")
</pallas_src>

<mosaic_0001>
module attributes {stable_mosaic.version = 11 : i64} {
  func.func @_yolo_loss_kernel(%arg0: i32, %arg1: memref<15x8x128xf32, #tpu.memory_space<vmem>>, %arg2: memref<8x128xf32, #tpu.memory_space<vmem>>) attributes {dimension_semantics = [#tpu.dimension_semantics<arbitrary>], iteration_bounds = array<i64: 1>, scalar_prefetch = 0 : i64, scratch_operands = 0 : i64, tpu.core_type = #tpu.core_type<tc>, window_params = [{transform_indices = @transform_0, window_bounds = array<i64: 15, 8, 128>}, {pipeline_mode = #tpu.pipeline_mode<synchronous>, transform_indices = @transform_1, window_bounds = array<i64: 8, 128>}]} {
    %c0_i32 = arith.constant 0 : i32
    %0 = arith.cmpi eq, %arg0, %c0_i32 : i32
    %1 = arith.extui %0 : i1 to i32
    %c0_i32_0 = arith.constant 0 : i32
    %2 = arith.cmpi ne, %1, %c0_i32_0 : i32
    scf.if %2 {
      %cst_34 = arith.constant 0.000000e+00 : f32
      %169 = vector.broadcast %cst_34 : f32 to vector<8x128xf32>
      %c0_35 = arith.constant 0 : index
      %c0_36 = arith.constant 0 : index
      %170 = vector.load %arg2[%c0_35, %c0_36] : memref<8x128xf32, #tpu.memory_space<vmem>>, vector<8x128xf32>
      tpu.vector_store %arg2[%c0_35, %c0_36], %169 {strides = array<i32>} : memref<8x128xf32, #tpu.memory_space<vmem>>, vector<8x128xf32>,
    } else {
    }
    %cst = arith.constant 0.000000e+00 : f32
    %3 = vector.broadcast %cst : f32 to vector<8x128xf32>
    %c0_i32_1 = arith.constant 0 : i32
    %c8_i32 = arith.constant 8 : i32
    %4 = arith.muli %c0_i32_1, %c8_i32 : i32
    %5 = tpu.assume_multiple %4, 8 : i32
    %c0 = arith.constant 0 : index
    %6 = arith.index_cast %5 : i32 to index
    %c0_2 = arith.constant 0 : index
    %7 = vector.load %arg1[%c0, %6, %c0_2] : memref<15x8x128xf32, #tpu.memory_space<vmem>>, vector<15x8x128xf32>
    %8 = vector.extract_strided_slice %7 {offsets = [0, 0, 0], sizes = [1, 8, 128], strides = [1, 1, 1]} : vector<15x8x128xf32> to vector<1x8x128xf32>
    %9 = vector.shape_cast %8 : vector<1x8x128xf32> to vector<8x128xf32>
    %10 = vector.extract_strided_slice %7 {offsets = [1, 0, 0], sizes = [1, 8, 128], strides = [1, 1, 1]} : vector<15x8x128xf32> to vector<1x8x128xf32>
    %11 = vector.shape_cast %10 : vector<1x8x128xf32> to vector<8x128xf32>
    %12 = vector.extract_strided_slice %7 {offsets = [2, 0, 0], sizes = [1, 8, 128], strides = [1, 1, 1]} : vector<15x8x128xf32> to vector<1x8x128xf32>
    %13 = vector.shape_cast %12 : vector<1x8x128xf32> to vector<8x128xf32>
    %14 = vector.extract_strided_slice %7 {offsets = [3, 0, 0], sizes = [1, 8, 128], strides = [1, 1, 1]} : vector<15x8x128xf32> to vector<1x8x128xf32>
    %15 = vector.shape_cast %14 : vector<1x8x128xf32> to vector<8x128xf32>
    %16 = vector.extract_strided_slice %7 {offsets = [4, 0, 0], sizes = [1, 8, 128], strides = [1, 1, 1]} : vector<15x8x128xf32> to vector<1x8x128xf32>
    %17 = vector.shape_cast %16 : vector<1x8x128xf32> to vector<8x128xf32>
    %18 = vector.extract_strided_slice %7 {offsets = [5, 0, 0], sizes = [1, 8, 128], strides = [1, 1, 1]} : vector<15x8x128xf32> to vector<1x8x128xf32>
    %19 = vector.shape_cast %18 : vector<1x8x128xf32> to vector<8x128xf32>
    %20 = vector.extract_strided_slice %7 {offsets = [6, 0, 0], sizes = [1, 8, 128], strides = [1, 1, 1]} : vector<15x8x128xf32> to vector<1x8x128xf32>
    %21 = vector.shape_cast %20 : vector<1x8x128xf32> to vector<8x128xf32>
    %22 = vector.extract_strided_slice %7 {offsets = [7, 0, 0], sizes = [1, 8, 128], strides = [1, 1, 1]} : vector<15x8x128xf32> to vector<1x8x128xf32>
    %23 = vector.shape_cast %22 : vector<1x8x128xf32> to vector<8x128xf32>
    %24 = vector.extract_strided_slice %7 {offsets = [8, 0, 0], sizes = [1, 8, 128], strides = [1, 1, 1]} : vector<15x8x128xf32> to vector<1x8x128xf32>
    %25 = vector.shape_cast %24 : vector<1x8x128xf32> to vector<8x128xf32>
    %26 = vector.extract_strided_slice %7 {offsets = [9, 0, 0], sizes = [1, 8, 128], strides = [1, 1, 1]} : vector<15x8x128xf32> to vector<1x8x128xf32>
    %27 = vector.shape_cast %26 : vector<1x8x128xf32> to vector<8x128xf32>
    %28 = vector.extract_strided_slice %7 {offsets = [10, 0, 0], sizes = [1, 8, 128], strides = [1, 1, 1]} : vector<15x8x128xf32> to vector<1x8x128xf32>
    %29 = vector.shape_cast %28 : vector<1x8x128xf32> to vector<8x128xf32>
    %30 = vector.extract_strided_slice %7 {offsets = [11, 0, 0], sizes = [1, 8, 128], strides = [1, 1, 1]} : vector<15x8x128xf32> to vector<1x8x128xf32>
    %31 = vector.shape_cast %30 : vector<1x8x128xf32> to vector<8x128xf32>
    %32 = vector.extract_strided_slice %7 {offsets = [12, 0, 0], sizes = [1, 8, 128], strides = [1, 1, 1]} : vector<15x8x128xf32> to vector<1x8x128xf32>
    %33 = vector.shape_cast %32 : vector<1x8x128xf32> to vector<8x128xf32>
    %34 = vector.extract_strided_slice %7 {offsets = [13, 0, 0], sizes = [1, 8, 128], strides = [1, 1, 1]} : vector<15x8x128xf32> to vector<1x8x128xf32>
    %35 = vector.shape_cast %34 : vector<1x8x128xf32> to vector<8x128xf32>
    %36 = vector.extract_strided_slice %7 {offsets = [14, 0, 0], sizes = [1, 8, 128], strides = [1, 1, 1]} : vector<15x8x128xf32> to vector<1x8x128xf32>
    %37 = vector.shape_cast %36 : vector<1x8x128xf32> to vector<8x128xf32>
    %cst_3 = arith.constant 6.400000e+01 : f32
    %38 = vector.broadcast %cst_3 : f32 to vector<8x128xf32>
    %39 = arith.mulf %29, %38 : vector<8x128xf32>
    %cst_4 = arith.constant 6.400000e+01 : f32
    %40 = vector.broadcast %cst_4 : f32 to vector<8x128xf32>
    %41 = arith.mulf %31, %40 : vector<8x128xf32>
    %cst_5 = arith.constant 2.240000e+02 : f32
    %42 = vector.broadcast %cst_5 : f32 to vector<8x128xf32>
    %43 = arith.mulf %33, %42 : vector<8x128xf32>
    %cst_6 = arith.constant 2.240000e+02 : f32
    %44 = vector.broadcast %cst_6 : f32 to vector<8x128xf32>
    %45 = arith.mulf %35, %44 : vector<8x128xf32>
    %46 = arith.subf %39, %43 : vector<8x128xf32>
    %47 = arith.addf %39, %43 : vector<8x128xf32>
    %48 = arith.subf %41, %45 : vector<8x128xf32>
    %49 = arith.addf %41, %43 : vector<8x128xf32>
    %50 = arith.subf %47, %46 : vector<8x128xf32>
    %51 = arith.subf %49, %48 : vector<8x128xf32>
    %52 = arith.mulf %50, %51 : vector<8x128xf32>
    %cst_7 = arith.constant 6.400000e+01 : f32
    %53 = vector.broadcast %cst_7 : f32 to vector<8x128xf32>
    %54 = arith.mulf %9, %53 : vector<8x128xf32>
    %cst_8 = arith.constant 6.400000e+01 : f32
    %55 = vector.broadcast %cst_8 : f32 to vector<8x128xf32>
    %56 = arith.mulf %11, %55 : vector<8x128xf32>
    %cst_9 = arith.constant 2.240000e+02 : f32
    %57 = vector.broadcast %cst_9 : f32 to vector<8x128xf32>
    %58 = arith.mulf %13, %57 : vector<8x128xf32>
    %cst_10 = arith.constant 2.240000e+02 : f32
    %59 = vector.broadcast %cst_10 : f32 to vector<8x128xf32>
    %60 = arith.mulf %15, %59 : vector<8x128xf32>
    %61 = arith.subf %54, %58 : vector<8x128xf32>
    %62 = arith.addf %54, %58 : vector<8x128xf32>
    %63 = arith.subf %56, %60 : vector<8x128xf32>
    %64 = arith.addf %56, %60 : vector<8x128xf32>
    %65 = arith.minimumf %62, %47 : vector<8x128xf32>
    %66 = arith.maximumf %61, %46 : vector<8x128xf32>
    %67 = arith.subf %65, %66 : vector<8x128xf32>
    %cst_11 = arith.constant 0.000000e+00 : f32
    %68 = vector.broadcast %cst_11 : f32 to vector<8x128xf32>
    %69 = arith.maximumf %67, %68 : vector<8x128xf32>
    %70 = arith.minimumf %64, %49 : vector<8x128xf32>
    %71 = arith.maximumf %63, %48 : vector<8x128xf32>
    %72 = arith.subf %70, %71 : vector<8x128xf32>
    %cst_12 = arith.constant 0.000000e+00 : f32
    %73 = vector.broadcast %cst_12 : f32 to vector<8x128xf32>
    %74 = arith.maximumf %72, %73 : vector<8x128xf32>
    %75 = arith.mulf %69, %74 : vector<8x128xf32>
    %76 = arith.subf %62, %61 : vector<8x128xf32>
    %77 = arith.subf %64, %63 : vector<8x128xf32>
    %78 = arith.mulf %76, %77 : vector<8x128xf32>
    %79 = arith.addf %78, %52 : vector<8x128xf32>
    %80 = arith.subf %79, %75 : vector<8x128xf32>
    %cst_13 = arith.constant 9.99999996E-13 : f32
    %81 = vector.broadcast %cst_13 : f32 to vector<8x128xf32>
    %82 = arith.addf %80, %81 : vector<8x128xf32>
    %83 = tpu.reciprocal %82 {approx = true} : vector<8x128xf32> -> vector<8x128xf32>
    %84 = arith.mulf %75, %83 : vector<8x128xf32>
    %cst_14 = arith.constant 6.400000e+01 : f32
    %85 = vector.broadcast %cst_14 : f32 to vector<8x128xf32>
    %86 = arith.mulf %19, %85 : vector<8x128xf32>
    %cst_15 = arith.constant 6.400000e+01 : f32
    %87 = vector.broadcast %cst_15 : f32 to vector<8x128xf32>
    %88 = arith.mulf %21, %87 : vector<8x128xf32>
    %cst_16 = arith.constant 2.240000e+02 : f32
    %89 = vector.broadcast %cst_16 : f32 to vector<8x128xf32>
    %90 = arith.mulf %23, %89 : vector<8x128xf32>
    %cst_17 = arith.constant 2.240000e+02 : f32
    %91 = vector.broadcast %cst_17 : f32 to vector<8x128xf32>
    %92 = arith.mulf %25, %91 : vector<8x128xf32>
    %93 = arith.subf %86, %90 : vector<8x128xf32>
    %94 = arith.addf %86, %90 : vector<8x128xf32>
    %95 = arith.subf %88, %92 : vector<8x128xf32>
    %96 = arith.addf %88, %92 : vector<8x128xf32>
    %97 = arith.minimumf %94, %47 : vector<8x128xf32>
    %98 = arith.maximumf %93, %46 : vector<8x128xf32>
    %99 = arith.subf %97, %98 : vector<8x128xf32>
    %cst_18 = arith.constant 0.000000e+00 : f32
    %100 = vector.broadcast %cst_18 : f32 to vector<8x128xf32>
    %101 = arith.maximumf %99, %100 : vector<8x128xf32>
    %102 = arith.minimumf %96, %49 : vector<8x128xf32>
    %103 = arith.maximumf %95, %48 : vector<8x128xf32>
    %104 = arith.subf %102, %103 : vector<8x128xf32>
    %cst_19 = arith.constant 0.000000e+00 : f32
    %105 = vector.broadcast %cst_19 : f32 to vector<8x128xf32>
    %106 = arith.maximumf %104, %105 : vector<8x128xf32>
    %107 = arith.mulf %101, %106 : vector<8x128xf32>
    %108 = arith.subf %94, %93 : vector<8x128xf32>
    %109 = arith.subf %96, %95 : vector<8x128xf32>
    %110 = arith.mulf %108, %109 : vector<8x128xf32>
    %111 = arith.addf %110, %52 : vector<8x128xf32>
    %112 = arith.subf %111, %107 : vector<8x128xf32>
    %cst_20 = arith.constant 9.99999996E-13 : f32
    %113 = vector.broadcast %cst_20 : f32 to vector<8x128xf32>
    %114 = arith.addf %112, %113 : vector<8x128xf32>
    %115 = tpu.reciprocal %114 {approx = true} : vector<8x128xf32> -> vector<8x128xf32>
    %116 = arith.mulf %107, %115 : vector<8x128xf32>
    %117 = arith.mulf %75, %114 : vector<8x128xf32>
    %118 = arith.mulf %107, %82 : vector<8x128xf32>
    %119 = arith.cmpf ogt, %117, %118 : vector<8x128xf32>
    %cst_21 = arith.constant dense<true> : vector<8x128xi1>
    %120 = arith.xori %119, %cst_21 : vector<8x128xi1>
    %121 = arith.select %120, %27, %17 : vector<8x128xi1>, vector<8x128xf32>
    %122 = arith.select %120, %116, %84 : vector<8x128xi1>, vector<8x128xf32>
    %123 = arith.subf %121, %122 : vector<8x128xf32>
    %124 = arith.mulf %123, %123 : vector<8x128xf32>
    %125 = arith.select %120, %19, %9 : vector<8x128xi1>, vector<8x128xf32>
    %126 = arith.select %120, %21, %11 : vector<8x128xi1>, vector<8x128xf32>
    %127 = arith.subf %125, %29 : vector<8x128xf32>
    %128 = arith.mulf %127, %127 : vector<8x128xf32>
    %129 = arith.subf %126, %31 : vector<8x128xf32>
    %130 = arith.mulf %129, %129 : vector<8x128xf32>
    %131 = arith.addf %128, %130 : vector<8x128xf32>
    %cst_22 = arith.constant 2.000000e+00 : f32
    %132 = vector.broadcast %cst_22 : f32 to vector<8x128xf32>
    %133 = arith.mulf %132, %131 : vector<8x128xf32>
    %134 = arith.select %120, %23, %13 : vector<8x128xi1>, vector<8x128xf32>
    %cst_23 = arith.constant 9.99999996E-13 : f32
    %135 = vector.broadcast %cst_23 : f32 to vector<8x128xf32>
    %136 = arith.maximumf %134, %135 : vector<8x128xf32>
    %137 = arith.select %120, %25, %15 : vector<8x128xi1>, vector<8x128xf32>
    %cst_24 = arith.constant 9.99999996E-13 : f32
    %138 = vector.broadcast %cst_24 : f32 to vector<8x128xf32>
    %139 = arith.maximumf %137, %138 : vector<8x128xf32>
    %cst_25 = arith.constant 9.99999996E-13 : f32
    %140 = vector.broadcast %cst_25 : f32 to vector<8x128xf32>
    %141 = arith.maximumf %33, %140 : vector<8x128xf32>
    %cst_26 = arith.constant 9.99999996E-13 : f32
    %142 = vector.broadcast %cst_26 : f32 to vector<8x128xf32>
    %143 = arith.maximumf %35, %142 : vector<8x128xf32>
    %144 = math.sqrt %136 : vector<8x128xf32>
    %145 = math.sqrt %141 : vector<8x128xf32>
    %146 = arith.subf %144, %145 : vector<8x128xf32>
    %147 = arith.mulf %146, %146 : vector<8x128xf32>
    %148 = math.sqrt %139 : vector<8x128xf32>
    %149 = math.sqrt %143 : vector<8x128xf32>
    %150 = arith.subf %148, %149 : vector<8x128xf32>
    %151 = arith.mulf %150, %150 : vector<8x128xf32>
    %152 = arith.addf %147, %151 : vector<8x128xf32>
    %cst_27 = arith.constant 2.000000e+00 : f32
    %153 = vector.broadcast %cst_27 : f32 to vector<8x128xf32>
    %154 = arith.mulf %153, %152 : vector<8x128xf32>
    %155 = arith.mulf %17, %17 : vector<8x128xf32>
    %156 = arith.mulf %27, %27 : vector<8x128xf32>
    %157 = arith.addf %155, %156 : vector<8x128xf32>
    %cst_28 = arith.constant 1.000000e-01 : f32
    %158 = vector.broadcast %cst_28 : f32 to vector<8x128xf32>
    %159 = arith.mulf %158, %157 : vector<8x128xf32>
    %cst_29 = arith.constant 1.000000e+00 : f32
    %160 = vector.broadcast %cst_29 : f32 to vector<8x128xf32>
    %161 = arith.cmpf oeq, %37, %160 : vector<8x128xf32>
    %162 = arith.addf %124, %133 : vector<8x128xf32>
    %163 = arith.addf %162, %154 : vector<8x128xf32>
    %164 = arith.select %161, %163, %159 : vector<8x128xi1>, vector<8x128xf32>
    %165 = arith.addf %3, %164 : vector<8x128xf32>
    %c1_i32 = arith.constant 1 : i32
    %c0_30 = arith.constant 0 : index
    %c0_31 = arith.constant 0 : index
    %166 = vector.load %arg2[%c0_30, %c0_31] : memref<8x128xf32, #tpu.memory_space<vmem>>, vector<8x128xf32>
    %167 = arith.addf %166, %165 : vector<8x128xf32>
    %c0_32 = arith.constant 0 : index
    %c0_33 = arith.constant 0 : index
    %168 = vector.load %arg2[%c0_32, %c0_33] : memref<8x128xf32, #tpu.memory_space<vmem>>, vector<8x128xf32>
    tpu.vector_store %arg2[%c0_32, %c0_33], %167 {strides = array<i32>} : memref<8x128xf32, #tpu.memory_space<vmem>>, vector<8x128xf32>,
    return
  }
  func.func @transform_0(%arg0: i32) -> (i32, i32, i32) {
    %c0_i32 = arith.constant 0 : i32
    %c0_i32_0 = arith.constant 0 : i32
    %c0_i32_1 = arith.constant 0 : i32
    return %c0_i32, %arg0, %c0_i32_0 : i32, i32, i32
  }
  func.func @transform_1(%arg0: i32) -> (i32, i32) {
    %c0_i32 = arith.constant 0 : i32
    %c0_i32_0 = arith.constant 0 : i32
    %c0_i32_1 = arith.constant 0 : i32
    return %c0_i32, %c0_i32_0 : i32, i32
  }
}

</mosaic_0001>

<bundles_post_ra>
// kernel: tpu_custom_call.1
= control target key start
LH: loop header
LB: loop body
LE: loop exit
PB: predicated region body
PF: predicated region fallthrough
CT: control target
= control target key end

     0   :  { %6 = vsyncpa [#allocation3], 0  ;;  %s349_s0 = inlined_call_operand.hbm [shape: f32[15,8,128], index: 0, kind: input, shape index: {}]   ;;  %s350_s1 = inlined_call_operand.hbm [shape: f32[8,128], index: 1, kind: output, shape index: {}]  }
   0x1   :  { %7 = vsyncpa [#allocation4], 0  ;;  %s253_s6 = smov [#allocation2]   ;;  %s205_s10 = scalar_lea.hbm %s349_s0, 1920 }
   0x2   :  { %s13_s7 = sshll.u32 %s253_s6, 4  ;;  %p206_p0 = scmp.ne.s32.totalorder %s349_s0, %s205_s10  ;;  %s14_s7 = int_to_ptr.vmem [resolvable:$true] %s13_s7 }
   0x3   :  { %p209_p1 = scmp.lt.u32.totalorder %s205_s10, %s349_s0 }
   0x5   :  { %p211_p2 = pnand %p209_p1, %p206_p0 }
   0x7   :  { %214 = shalt.err (!%p211_p2)
}
   0x8   :  { %s215_s15 = scalar_lea.vmem %s14_s7, 1920  ;;  %p220_p4 = scmp.lt.s32.totalorder %s14_s7, %s14_s7 }
   0x9   :  { %p216_p3 = scmp.ne.s32.totalorder %s14_s7, %s215_s15  ;;  %p221_p5 = scmp.lt.s32.totalorder %s215_s15, %s215_s15 }
   0xb   :  { %p222_p6 = por %p221_p5, %p220_p4 }
   0xd   :  { %p223_p7 = pnand %p222_p6, %p216_p3 }
   0xf   :  { %226 = shalt.err (!%p223_p7)
}
  0x10   :  { %s254_s16 = smov 128   ;;  %s255_s17 = smov 8  }
  0x11   :  { %19 = dma.hbm_to_vmem [thread:$0]  %s349_s0, 1920, %s14_s7, [#allocation3], %s254_s16, %s254_s16, %s255_s17  }
  0x12   :  { %249 = dma.done.wait [#allocation3], 1920  }
  0x13   :  { %250 = vsyncadd [#allocation3], 4294965376  ;;  %v280_v0 = vld [vmem:[#allocation2] sm:$0xff]  ;;  %v282_v1 = vld [vmem:[#allocation2 + $0x8] sm:$0xff]  ;;  %vm256_vm1 = vmmov 1   ;;  %s257_s0 = smov [#allocation5]  }
  0x14   :  { %v284_v2 = vld [vmem:[#allocation2 + $0x10] sm:$0xff]  ;;  %v286_v3 = vld [vmem:[#allocation2 + $0x18] sm:$0xff]  ;;  %v288_v4 = vld [vmem:[#allocation2 + $0x28] sm:$0xff]  ;;  %v54_v5 = vmul.f32 64.0, %v280_v0  ;;  %v55_v6 = vmul.f32 64.0, %v282_v1  ;;  %s178_s20 = sshll.u32 %s257_s0, 4  ;;  %s179_s20 = int_to_ptr.vmem [resolvable:$true] %s178_s20 }
  0x15   :  { %v56_v7 = vmul.f32 224.0, %v284_v2  ;;  %v293_v8 = vld [vmem:[#allocation2 + $0x30] sm:$0xff]  ;;  %v295_v9 = vld [vmem:[#allocation2 + $0x38] sm:$0xff]  ;;  %v297_v10 = vld [vmem:[#allocation2 + $0x40] sm:$0xff]  ;;  %v57_v11 = vmul.f32 224.0, %v286_v3  ;;  %v79_v12 = vmul.f32 64.0, %v288_v4  ;;  %p232_p9 = scmp.lt.s32.totalorder %s179_s20, %s179_s20 }
  0x16   :  { %v301_v13 = vld [vmem:[#allocation2 + $0x50] sm:$0xff]  ;;  %v303_v14 = vld [vmem:[#allocation2 + $0x58] sm:$0xff]  ;;  %v80_v17 = vmul.f32 64.0, %v293_v8  ;;  %v81_v18 = vmul.f32 224.0, %v295_v9  ;;  %v40_v19 = vld [vmem:[#allocation2 + $0x60] sm:$0xff]  ;;  %v82_v28 = vmul.f32 224.0, %v297_v10 }
  0x17   :  { %v58_v15 = vsub.f32 %v54_v5, %v56_v7  ;;  %v59_v16 = vadd.f32 %v56_v7, %v54_v5  ;;  %v41_v20 = vld [vmem:[#allocation2 + $0x68] sm:$0xff]  ;;  %v43_v21 = vmul.f32 64.0, %v301_v13  ;;  %v44_v22 = vmul.f32 64.0, %v303_v14  ;;  %s227_s21 = scalar_lea.vmem %s179_s20, 128 }
  0x18   :  { %v60_v23 = vsub.f32 %v55_v6, %v57_v11  ;;  %v61_v24 = vadd.f32 %v57_v11, %v55_v6  ;;  %v45_v25 = vmul.f32 224.0, %v40_v19  ;;  %v46_v26 = vmul.f32 224.0, %v41_v20  ;;  %p228_p8 = scmp.ne.s32.totalorder %s179_s20, %s227_s21  ;;  %p233_p10 = scmp.lt.s32.totalorder %s227_s21, %s227_s21 }
  0x19   :  { %v71_v27 = vsub.f32 %v59_v16, %v58_v15  ;;  %v83_v30 = vsub.f32 %v79_v12, %v81_v18  ;;  %v84_v31 = vadd.f32 %v81_v18, %v79_v12  ;;  %v85_v37 = vsub.f32 %v80_v17, %v82_v28 }
  0x1a   :  { %v72_v29 = vsub.f32 %v61_v24, %v60_v23  ;;  %v47_v32 = vsub.f32 %v43_v21, %v45_v25  ;;  %v48_v33 = vadd.f32 %v45_v25, %v43_v21  ;;  %v49_v34 = vsub.f32 %v44_v22, %v46_v26  ;;  %p234_p11 = por %p233_p10, %p232_p9 }
  0x1b   :  { %v50_v35 = vadd.f32 %v45_v25, %v44_v22  ;;  %v86_v38 = vadd.f32 %v82_v28, %v80_v17  ;;  %v96_v39 = vsub.f32 %v84_v31, %v83_v30  ;;  %v124_v5 = vmax.f32 %v40_v19, 1e-12 }
  0x1c   :  { %v73_v36 = vmul.f32 %v72_v29, %v71_v27  ;;  %v51_v40 = vsub.f32 %v48_v33, %v47_v32  ;;  %v62_v42 = vmin.f32 %v59_v16, %v48_v33  ;;  %v63_v43 = vmax.f32 %v58_v15, %v47_v32  ;;  %p235_p12 = pnand %p234_p11, %p228_p8 }
  0x1d   :  { %v52_v41 = vsub.f32 %v50_v35, %v49_v34  ;;  %v66_v44 = vmin.f32 %v61_v24, %v50_v35  ;;  %v67_v45 = vmax.f32 %v60_v23, %v49_v34  ;;  %v87_v46 = vmin.f32 %v84_v31, %v48_v33  ;;  %v32_v31 = vld [vmem:[#allocation2 + $0x20] sm:$0xff] }
  0x1e   :  { %v88_v47 = vmax.f32 %v83_v30, %v47_v32  ;;  %v64_v49 = vsub.f32 %v62_v42, %v63_v43  ;;  %v91_v50 = vmin.f32 %v86_v38, %v50_v35  ;;  %v92_v51 = vmax.f32 %v85_v37, %v49_v34  ;;  %v37_v32 = vld [vmem:[#allocation2 + $0x48] sm:$0xff] }
  0x1f   :  { %v53_v48 = vmul.f32 %v52_v41, %v51_v40  ;;  %v68_v52 = vsub.f32 %v66_v44, %v67_v45  ;;  %v97_v54 = vsub.f32 %v86_v38, %v85_v37  ;;  %v125_v7 = vmax.f32 %v41_v20, 1e-12 }
  0x20   :  { %v89_v53 = vsub.f32 %v87_v46, %v88_v47  ;;  %v65_v55 = vmax.f32 %v64_v49, 0.0  ;;  %v93_v56 = vsub.f32 %v91_v50, %v92_v51  ;;  %193 = vrsqrt.f32 %v124_v5 }
  0x21   :  { %v69_v57 = vmax.f32 %v68_v52, 0.0  ;;  %v74_v58 = vadd.f32 %v73_v36, %v53_v48  ;;  %v98_v60 = vmul.f32 %v97_v54, %v96_v39  ;;  %195 = vrsqrt.f32 %v125_v7 }
  0x22   :  { %v90_v59 = vmax.f32 %v89_v53, 0.0  ;;  %v94_v61 = vmax.f32 %v93_v56, 0.0  ;;  %vm135_vm3 = vcmp.eq.f32.partialorder %v124_v5, inf  ;;  %v138_v33 = vand.u32 2147483648, %v124_v5 }
  0x23   :  { %v70_v62 = vmul.f32 %v69_v57, %v65_v55  ;;  %v99_v63 = vadd.f32 %v98_v60, %v53_v48  ;;  %vm137_vm4 = vcmp.eq.f32.partialorder %v124_v5, 0.0  ;;  %vm151_vm5 = vcmp.eq.f32.partialorder %v125_v7, inf }
  0x24   :  { %v95_v6 = vmul.f32 %v94_v61, %v90_v59  ;;  %vm153_vm6 = vcmp.eq.f32.partialorder %v125_v7, 0.0  ;;  %v160_v49 = vmul.f32 %v32_v31, %v32_v31  ;;  %v161_v50 = vmul.f32 %v37_v32, %v37_v32  ;;  %v42_v59 = vld [vmem:[#allocation2 + $0x70] sm:$0xff] }
  0x25   :  { %v75_v11 = vsub.f32 %v74_v58, %v70_v62  ;;  %vm164_vm11 = vcmp.eq.f32.partialorder %v42_v59, 1.0 }
  0x26   :  { %v100_v12 = vsub.f32 %v99_v63, %v95_v6  ;;  %v162_v58 = vadd.f32 %v161_v50, %v160_v49 }
  0x27   :  { %v76_v15 = vadd.f32 1e-12, %v75_v11 }
  0x28   :  { %v101_v16 = vadd.f32 1e-12, %v100_v12  ;;  %v163_v63 = vmul.f32 0.1, %v162_v58 }
  0x29   :  { %197 = vrcp.f32 %v76_v15  ;;  %v105_v17 = vmul.f32 %v95_v6, %v76_v15 }
  0x2a   :  { %199 = vrcp.f32 %v101_v16  ;;  %v104_v18 = vmul.f32 %v101_v16, %v70_v62  ;;  %v194_v24 = vpop.eup %193 }
  0x2b   :  { %v196_v25 = vpop.eup %195  ;;  %v134_v28 = vmul.f32 %v194_v24, %v124_v5 }
  0x2c   :  { %vm106_vm0 = vcmp.gt.f32.partialorder %v104_v18, %v105_v17 }
  0x2d   :  { %vm310_vm2 = vmxor %vm106_vm0, %vm256_vm1 }
  0x2e   :  { %v120_v19 = vsel %vm310_vm2, %v295_v9, %v284_v2  ;;  %v122_v22 = vsel %vm310_vm2, %v297_v10, %v286_v3  ;;  %v112_v26 = vsel %vm310_vm2, %v288_v4, %v280_v0  ;;  %v113_v2 = vsel %vm310_vm2, %v293_v8, %v282_v1 }
  0x2f   :  { %v121_v20 = vmax.f32 %v120_v19, 1e-12  ;;  %v123_v23 = vmax.f32 %v122_v22, 1e-12  ;;  %v114_v3 = vsub.f32 %v112_v26, %v301_v13  ;;  %v116_v10 = vsub.f32 %v113_v2, %v303_v14 }
  0x30   :  { %v150_v0 = vmul.f32 %v196_v25, %v125_v7  ;;  %v136_v4 = vsel %vm135_vm3, %v124_v5, %v134_v28  ;;  %v108_v8 = vsel %vm310_vm2, %v37_v32, %v32_v31  ;;  %v154_v14 = vand.u32 2147483648, %v125_v7 }
  0x31   :  { %201 = vrsqrt.f32 %v121_v20  ;;  %v115_v34 = vmul.f32 %v114_v3, %v114_v3  ;;  %v117_v1 = vmul.f32 %v116_v10, %v116_v10  ;;  %vm128_vm7 = vcmp.eq.f32.partialorder %v121_v20, inf }
  0x32   :  { %203 = vrsqrt.f32 %v123_v23  ;;  %v131_v36 = vand.u32 2147483648, %v121_v20  ;;  %v139_v37 = vsel %vm137_vm4, %v138_v33, %v136_v4  ;;  %v152_v38 = vsel %vm151_vm5, %v125_v7, %v150_v0 }
  0x33   :  { %v198_v9 = vpop.eup %197  ;;  %vm130_vm8 = vcmp.eq.f32.partialorder %v121_v20, 0.0  ;;  %vm144_vm9 = vcmp.eq.f32.partialorder %v123_v23, inf  ;;  %v147_v41 = vand.u32 2147483648, %v123_v23  ;;  %v118_v43 = vadd.f32 %v117_v1, %v115_v34 }
  0x34   :  { %v200_v27 = vpop.eup %199  ;;  %v78_v29 = vmul.f32 %v198_v9, %v70_v62  ;;  %vm146_vm10 = vcmp.eq.f32.partialorder %v123_v23, 0.0  ;;  %v155_v46 = vsel %vm153_vm6, %v154_v14, %v152_v38 }
  0x35   :  { %v103_v30 = vmul.f32 %v200_v27, %v95_v6  ;;  %v119_v54 = vmul.f32 2.0, %v118_v43 }
  0x37   :  { %v109_v13 = vsel %vm310_vm2, %v103_v30, %v78_v29 }
  0x38   :  { %v110_v42 = vsub.f32 %v108_v8, %v109_v13 }
  0x3a   :  { %v111_v53 = vmul.f32 %v110_v42, %v110_v42 }
  0x3b   :  { %v202_v35 = vpop.eup %201 }
  0x3c   :  { %v204_v39 = vpop.eup %203  ;;  %v127_v40 = vmul.f32 %v202_v35, %v121_v20  ;;  %v165_v61 = vadd.f32 %v119_v54, %v111_v53 }
  0x3d   :  { %v143_v44 = vmul.f32 %v204_v39, %v123_v23 }
  0x3e   :  { %v129_v45 = vsel %vm128_vm7, %v121_v20, %v127_v40 }
  0x3f   :  { %v132_v47 = vsel %vm130_vm8, %v131_v36, %v129_v45  ;;  %v145_v48 = vsel %vm144_vm9, %v123_v23, %v143_v44 }
  0x40   :  { %v140_v51 = vsub.f32 %v132_v47, %v139_v37  ;;  %v148_v52 = vsel %vm146_vm10, %v147_v41, %v145_v48 }
  0x41   :  { %v156_v55 = vsub.f32 %v148_v52, %v155_v46 }
  0x42   :  { %v141_v56 = vmul.f32 %v140_v51, %v140_v51 }
  0x43   :  { %v157_v57 = vmul.f32 %v156_v55, %v156_v55 }
  0x45   :  { %v158_v60 = vadd.f32 %v157_v57, %v141_v56 }
  0x47   :  { %v159_v62 = vmul.f32 2.0, %v158_v60 }
  0x49   :  { %v166_v5 = vadd.f32 %v165_v61, %v159_v62 }
  0x4b   :  { %v167_v6 = vsel %vm164_vm11, %v166_v5, %v163_v63 }
  0x4c   :  { %171 = vst [vmem:[#allocation5] sm:$0xff] %v167_v6 }
  0x4d   :  { %238 = shalt.err (!%p235_p12)
}
  0x4e   :  { %s239_s24 = scalar_lea.hbm %s350_s1, 128 }
  0x4f   :  { %p240_p13 = scmp.ne.s32.totalorder %s350_s1, %s239_s24  ;;  %p243_p0 = scmp.lt.u32.totalorder %s239_s24, %s350_s1 }
  0x51   :  { %p245_p1 = pnand %p243_p0, %p240_p13 }
  0x53   :  { %248 = shalt.err (!%p245_p1)
}
  0x54   :  { %181 = dma.vmem_to_hbm [thread:$0]  %s179_s20, 128, %s350_s1, [#allocation4]  }
  0x55   :  { %251 = dma.done.wait [#allocation4], 128  }
  0x56   :  { %252 = vsyncadd [#allocation4], 4294967168 }
  0x57   :  { %185 = vsyncpa [#allocation3], 1 }
  0x58   :  { %186 = vsyncpa [#allocation4], 1 }

</bundles_post_ra>
